<compile_context>
chip_gen: v7x
topology: tpu7x:2x2x1
jax: 0.10.0
libtpu: 0.0.40
codegen_flags: <defaults>
</compile_context>

<pallas_src>
import functools

import jax
import jax.numpy as jnp
from jax import lax
from jax.experimental import pallas as pl
from jax.experimental.pallas import tpu as pltpu

_BF16 = jnp.bfloat16
# Above this xcol size (bytes, bf16) switch to per-tap accumulation so the
# fused-K buffer does not blow the v7x VMEM budget at realistic UNet sizes.
_XCOL_BYTES_LIMIT = 4 << 20


def _round_up(n, m):
    return (n + m - 1) // m * m


def _nbytes(shape, dtype):
    n = 1
    for d in shape:
        n *= int(d)
    return n * jnp.dtype(dtype).itemsize


def down_block_kernel(*refs, H, W, identity_residual):
    if identity_residual:
        (x_ref, add1_ref, mask_ref, w1_ref, w2_ref, b2_ref,
         e0_ref, e1_ref, s0_ref, s1_ref, out_ref, pool_ref) = refs
        wr_ref = None
    else:
        (x_ref, add1_ref, mask_ref, w1_ref, w2_ref, wr_ref, b2_ref,
         e0_ref, e1_ref, s0_ref, s1_ref, out_ref, pool_ref) = refs

    HW = H * W
    Cin = x_ref.shape[1]
    Cout = out_ref.shape[1]

    x = x_ref[0]                                  # (Cin, HW) f32, lane-dense

    # Hoisted boundary-mask broadcasts (JAX does not CSE broadcast_in_dim).
    def bcast_masks(C):
        return [None if t == 4 else
                jnp.broadcast_to(mask_ref[pl.ds(t, 1), :], (C, HW))
                for t in range(9)]

    masks_in = bcast_masks(Cin)
    masks_mid = masks_in if Cout == Cin else bcast_masks(Cout)

    def conv3x3(a, w_ref, masks):
        """3x3 'padding=1' conv of a:(C,HW) with w:(Cout,9C) bf16 -> (Cout,HW) f32."""
        C = a.shape[0]
        accumulate = 9 * C * HW * 2 > _XCOL_BYTES_LIMIT
        taps = []
        acc = None
        for t in range(9):
            off = (t // 3 - 1) * W + (t % 3 - 1)
            r = a if off == 0 else pltpu.roll(a, (-off) % HW, axis=1)
            if t != 4:                            # center tap: mask is all-ones
                r = r * masks[t]
            if accumulate:
                # Per-tap K=C matmuls keep VMEM at O(C*HW) instead of 9x.
                part = jnp.dot(w_ref[:, t * C:(t + 1) * C], r.astype(_BF16),
                               preferred_element_type=jnp.float32)
                acc = part if acc is None else acc + part
            else:
                taps.append(r)
        if accumulate:
            return acc
        # 8k-row f32 slabs are sublane-tile aligned -> the K-concat is plain
        # tile copies; one bf16 cast, then a single fused K=9*C MXU matmul.
        xcol = jnp.concatenate(taps, axis=0).astype(_BF16)       # (9*C, HW)
        return jnp.dot(w_ref[...], xcol, preferred_element_type=jnp.float32)

    # conv1 + (conv1 bias + relu(time_layer)) followed by ReLU
    h1 = jnp.maximum(conv3x3(x, w1_ref, masks_in) + add1_ref[0], 0.0)

    # conv2 on the in-register conv1 output (edges handled by masks)
    h2 = conv3x3(h1, w2_ref, masks_mid)

    # residual: 1x1 conv, or a plain add when residual_conv is nn.Identity()
    if identity_residual:
        res = x
    else:
        res = jnp.dot(wr_ref[...], x.astype(_BF16),
                      preferred_element_type=jnp.float32)

    out = h2 + res + b2_ref[...]                  # (Cout, HW) f32
    out_ref[0] = out.astype(out_ref.dtype)        # lane-dense store (HW lanes)

    # MaxPool2d(2), lane-dense: 2x2 neighbours via XLU lane rolls (wrapped
    # lanes are never among the selected even-(h,w) positions), then one-hot
    # selection matmuls compact the even lanes and interleave channel pairs
    # onto lanes -> (Cout/2, HW/2) store, 128 lanes wide at the test size.
    m = out
    for off in (1, W, W + 1):
        m = jnp.maximum(m, pltpu.roll(out, (-off) % HW, axis=1))
    m_even = jnp.dot(e0_ref[...], m, preferred_element_type=jnp.float32)
    m_odd = jnp.dot(e1_ref[...], m, preferred_element_type=jnp.float32)
    pooled = (jnp.dot(m_even, s0_ref[...], preferred_element_type=jnp.float32)
              + jnp.dot(m_odd, s1_ref[...], preferred_element_type=jnp.float32))
    pool_ref[0] = pooled.astype(pool_ref.dtype)


def build_down_block(params, H, W):
    """Precompute all data-independent operands once; return a jittable forward."""
    assert H % 2 == 0 and W % 2 == 0, "pool path assumes even H, W"
    # TODO(synk): odd H/W would need PyTorch MaxPool2d floor-mode cropping.
    f32 = jnp.float32
    HW = H * W
    PP = HW // 4

    Cin, Cout = params["w1"].shape[2], params["w1"].shape[3]
    identity = "wr" not in params
    if identity:
        assert Cin == Cout
    Cp_in, Cp_out = _round_up(Cin, 8), _round_up(Cout, 8)

    # --- conv weights: channel-pad to sublane multiples, taps fused along K,
    # --- bf16 operands (accumulation stays f32 on the MXU).
    w1p = jnp.pad(params["w1"].astype(f32),
                  ((0, 0), (0, 0), (0, Cp_in - Cin), (0, Cp_out - Cout)))
    w1c = jnp.transpose(w1p, (3, 0, 1, 2)).reshape(Cp_out, 9 * Cp_in).astype(_BF16)
    w2p = jnp.pad(params["w2"].astype(f32),
                  ((0, 0), (0, 0), (0, Cp_out - Cout), (0, Cp_out - Cout)))
    w2c = jnp.transpose(w2p, (3, 0, 1, 2)).reshape(Cp_out, 9 * Cp_out).astype(_BF16)
    if identity:
        wrc = None
        br = jnp.zeros((1, Cout), f32)
    else:
        wrp = jnp.pad(params["wr"].astype(f32),
                      ((0, Cp_in - Cin), (0, Cp_out - Cout)))
        wrc = wrp.T.astype(_BF16)                               # (Cp_out, Cp_in)
        br = params["br"].astype(f32)

    b2r = jnp.pad((params["b2"].astype(f32) + br).reshape(Cout, 1),
                  ((0, Cp_out - Cout), (0, 0)))                  # (Cp_out, 1)

    # --- 0/1 validity masks per 3x3 tap (implements the zero padding). ---
    hh = jnp.arange(H)[:, None]
    ww = jnp.arange(W)[None, :]
    masks = []
    for t in range(9):
        dh, dw = t // 3 - 1, t % 3 - 1
        valid = ((hh + dh >= 0) & (hh + dh < H) &
                 (ww + dw >= 0) & (ww + dw < W))
        masks.append(valid.reshape(HW))
    mask = jnp.stack(masks).astype(f32)                          # (9, HW)

    # --- MaxPool selection matrices: compact even-(h,w) lanes and interleave
    # --- channel pairs onto the lane axis (pooled store is HW/2 lanes wide).
    j = jnp.arange(PP)
    sel = (2 * (j // (W // 2))) * W + 2 * (j % (W // 2))         # (PP,)
    S = (jnp.arange(HW)[:, None] == sel[None, :]).astype(f32)    # (HW, PP)
    Z = jnp.zeros((HW, PP), f32)
    S0 = jnp.concatenate([S, Z], axis=1)                         # (HW, HW//2)
    S1 = jnp.concatenate([Z, S], axis=1)
    rows = jnp.arange(Cp_out // 2)
    E0 = (jnp.arange(Cp_out)[None, :] == (2 * rows)[:, None]).astype(f32)
    E1 = (jnp.arange(Cp_out)[None, :] == (2 * rows + 1)[:, None]).astype(f32)

    const_inputs = ([mask, w1c, w2c] + ([] if identity else [wrc])
                    + [b2r, E0, E1, S0, S1])

    time_w = params["wt"].astype(f32)
    time_b = params["bt"].astype(f32)
    conv1_b = params["b1"].astype(f32)

    kernel = functools.partial(down_block_kernel, H=H, W=W,
                               identity_residual=identity)

    def const_spec(shape):
        return pl.BlockSpec(shape, lambda b: (0,) * len(shape))

    def make_call(B):
        in_specs = ([pl.BlockSpec((1, Cp_in, HW), lambda b: (b, 0, 0)),
                     pl.BlockSpec((1, Cp_out, 1), lambda b: (b, 0, 0))]
                    + [const_spec(tuple(a.shape)) for a in const_inputs])
        out_specs = [pl.BlockSpec((1, Cp_out, HW), lambda b: (b, 0, 0)),
                     pl.BlockSpec((1, Cp_out // 2, HW // 2), lambda b: (b, 0, 0))]

        # Rough VMEM budget: double-buffered blocks + in-kernel temporaries.
        blk_bytes = (_nbytes((1, Cp_in, HW), f32) + _nbytes((1, Cp_out, 1), f32)
                     + sum(_nbytes(a.shape, a.dtype) for a in const_inputs)
                     + _nbytes((1, Cp_out, HW), f32)
                     + _nbytes((1, Cp_out // 2, HW // 2), f32))
        scratch_bytes = (8 * Cp_out * HW * 4                      # activations
                         + 9 * max(Cp_in, Cp_out) * HW * 2)       # fused-K xcol
        vmem_limit = int(min(100 << 20, max(32 << 20, 2 * blk_bytes + scratch_bytes)))

        # TODO(synk): for large H*W, add an H row-band grid axis (with 2-row
        # halos for the chained 3x3 convs) so BlockSpec double-buffering
        # overlaps HBM DMA with compute under the v7x 64 MiB VMEM budget.
        return pl.pallas_call(
            kernel,
            out_shape=(jax.ShapeDtypeStruct((B, Cp_out, HW), f32),
                       jax.ShapeDtypeStruct((B, Cp_out // 2, HW // 2), f32)),
            grid_spec=pltpu.PrefetchScalarGridSpec(
                num_scalar_prefetch=0,
                grid=(B,),                  # batch sharded across TCs on v7x
                in_specs=in_specs,
                out_specs=out_specs),
            compiler_params=pltpu.CompilerParams(
                dimension_semantics=("parallel",),
                vmem_limit_bytes=vmem_limit))

    def forward(x_nchw, time_emb):
        B = x_nchw.shape[0]
        x = x_nchw.astype(f32).reshape(B, Cin, HW)
        x = jnp.pad(x, ((0, 0), (0, Cp_in - Cin), (0, 0)))       # (B, Cp_in, HW)
        # time_layer (Linear + ReLU) for the whole batch + conv1 bias, one
        # batched XLA matmul outside the kernel.
        add1 = jnp.maximum(time_emb.astype(f32) @ time_w + time_b, 0.0) + conv1_b
        add1 = jnp.pad(add1, ((0, 0), (0, Cp_out - Cout))).reshape(B, Cp_out, 1)

        out, pooled = make_call(B)(x, add1, *const_inputs)
        out = out[:, :Cout, :].reshape(B, Cout, H, W)
        pooled = pooled.reshape(B, Cp_out, PP)[:, :Cout, :].reshape(
            B, Cout, H // 2, W // 2)
        return out, pooled

    return forward


def make_params(key, in_channel, out_channel, time_emb_dim):
    ks = jax.random.split(key, 8)
    s = 0.1
    p = {
        "w1": s * jax.random.normal(ks[0], (3, 3, in_channel, out_channel), jnp.float32),
        "b1": s * jax.random.normal(ks[1], (1, out_channel), jnp.float32),
        "wt": s * jax.random.normal(ks[2], (time_emb_dim, out_channel), jnp.float32),
        "bt": s * jax.random.normal(ks[3], (1, out_channel), jnp.float32),
        "w2": s * jax.random.normal(ks[4], (3, 3, out_channel, out_channel), jnp.float32),
        "b2": s * jax.random.normal(ks[5], (1, out_channel), jnp.float32),
    }
    if in_channel != out_channel:
        p["wr"] = s * jax.random.normal(ks[6], (in_channel, out_channel), jnp.float32)
        p["br"] = s * jax.random.normal(ks[7], (1, out_channel), jnp.float32)
    # else: residual_conv is nn.Identity() -> handled by the identity add path.
    return p


def ref_forward(x_nchw, time_emb, params):
    """Pure-JAX (XLA conv) reference mirroring the PyTorch forward in NCHW."""
    B = x_nchw.shape[0]
    dn = ("NCHW", "OIHW", "NCHW")
    w1 = jnp.transpose(params["w1"], (3, 2, 0, 1))
    w2 = jnp.transpose(params["w2"], (3, 2, 0, 1))

    out = lax.conv_general_dilated(x_nchw, w1, (1, 1), "SAME",
                                   dimension_numbers=dn)
    out = out + params["b1"].reshape(1, -1, 1, 1)
    temb = jnp.maximum(time_emb @ params["wt"] + params["bt"], 0.0)
    out = jnp.maximum(out + temb.reshape(B, -1, 1, 1), 0.0)
    out = lax.conv_general_dilated(out, w2, (1, 1), "SAME",
                                   dimension_numbers=dn)
    out = out + params["b2"].reshape(1, -1, 1, 1)
    if "wr" in params:
        wr = jnp.transpose(params["wr"], (1, 0))[:, :, None, None]
        res = lax.conv_general_dilated(x_nchw, wr, (1, 1), "SAME",
                                       dimension_numbers=dn)
        res = res + params["br"].reshape(1, -1, 1, 1)
    else:
        res = x_nchw
    out = out + res
    pooled = lax.reduce_window(out, -jnp.inf, lax.max,
                               (1, 1, 2, 2), (1, 1, 2, 2), "VALID")
    return out, pooled


if __name__ == "__main__":
    B, Cin, Cout, H, W, Temb = 2, 4, 8, 16, 16, 32

    key = jax.random.PRNGKey(0)
    kx, kt, kp = jax.random.split(key, 3)
    x = jax.random.normal(kx, (B, Cin, H, W), jnp.float32)
    time_emb = jax.random.normal(kt, (B, Temb), jnp.float32)
    params = make_params(kp, Cin, Cout, Temb)

    forward = jax.jit(build_down_block(params, H, W))
    out, pooled = forward(x, time_emb)
    jax.block_until_ready((out, pooled))

    ref_out, ref_pool = ref_forward(x, time_emb, params)
    assert out.shape == (B, Cout, H, W) and pooled.shape == (B, Cout, H // 2, W // 2)
    # Tolerance deliberately loosened for bf16 MXU operands (f32 accumulation).
    assert jnp.allclose(out, ref_out, atol=2e-2, rtol=2e-2)
    assert jnp.allclose(pooled, ref_pool, atol=2e-2, rtol=2e-2)

    print("KERNEL_OK")
</pallas_src>

<mosaic_0001>
module attributes {stable_mosaic.version = 11 : i64} {
  func.func @down_block_kernel(%arg0: i32, %arg1: memref<1x8x256xf32, #tpu.memory_space<vmem>>, %arg2: memref<1x8x1xf32, #tpu.memory_space<vmem>>, %arg3: memref<9x256xf32, #tpu.memory_space<vmem>>, %arg4: memref<8x72xbf16, #tpu.memory_space<vmem>>, %arg5: memref<8x72xbf16, #tpu.memory_space<vmem>>, %arg6: memref<8x8xbf16, #tpu.memory_space<vmem>>, %arg7: memref<8x1xf32, #tpu.memory_space<vmem>>, %arg8: memref<4x8xf32, #tpu.memory_space<vmem>>, %arg9: memref<4x8xf32, #tpu.memory_space<vmem>>, %arg10: memref<256x128xf32, #tpu.memory_space<vmem>>, %arg11: memref<256x128xf32, #tpu.memory_space<vmem>>, %arg12: memref<1x8x256xf32, #tpu.memory_space<vmem>>, %arg13: memref<1x4x128xf32, #tpu.memory_space<vmem>>) attributes {dimension_semantics = [#tpu.dimension_semantics<parallel>], iteration_bounds = array<i64: 2>, scalar_prefetch = 0 : i64, scratch_operands = 0 : i64, tpu.core_type = #tpu.core_type<tc>, window_params = [{transform_indices = @transform_0, window_bounds = array<i64: 1, 8, 256>}, {transform_indices = @transform_1, window_bounds = array<i64: 1, 8, 1>}, {pipeline_mode = #tpu.pipeline_mode<synchronous>, transform_indices = @transform_2, window_bounds = array<i64: 9, 256>}, {pipeline_mode = #tpu.pipeline_mode<synchronous>, transform_indices = @transform_3, window_bounds = array<i64: 8, 72>}, {pipeline_mode = #tpu.pipeline_mode<synchronous>, transform_indices = @transform_4, window_bounds = array<i64: 8, 72>}, {pipeline_mode = #tpu.pipeline_mode<synchronous>, transform_indices = @transform_5, window_bounds = array<i64: 8, 8>}, {pipeline_mode = #tpu.pipeline_mode<synchronous>, transform_indices = @transform_6, window_bounds = array<i64: 8, 1>}, {pipeline_mode = #tpu.pipeline_mode<synchronous>, transform_indices = @transform_7, window_bounds = array<i64: 4, 8>}, {pipeline_mode = #tpu.pipeline_mode<synchronous>, transform_indices = @transform_8, window_bounds = array<i64: 4, 8>}, {pipeline_mode = #tpu.pipeline_mode<synchronous>, transform_indices = @transform_9, window_bounds = array<i64: 256, 128>}, {pipeline_mode = #tpu.pipeline_mode<synchronous>, transform_indices = @transform_10, window_bounds = array<i64: 256, 128>}, {transform_indices = @transform_11, window_bounds = array<i64: 1, 8, 256>}, {transform_indices = @transform_12, window_bounds = array<i64: 1, 4, 128>}]} {
    %c0 = arith.constant 0 : index
    %c0_0 = arith.constant 0 : index
    %c0_1 = arith.constant 0 : index
    %0 = vector.load %arg1[%c0, %c0_0, %c0_1] : memref<1x8x256xf32, #tpu.memory_space<vmem>>, vector<1x8x256xf32>
    %1 = vector.shape_cast %0 : vector<1x8x256xf32> to vector<8x256xf32>
    %c0_2 = arith.constant 0 : index
    %c0_3 = arith.constant 0 : index
    %2 = vector.load %arg3[%c0_2, %c0_3] : memref<9x256xf32, #tpu.memory_space<vmem>>, vector<1x256xf32>
    %3 = vector.shape_cast %2 : vector<1x256xf32> to vector<1x256xf32>
    %4 = vector.broadcast %3 : vector<1x256xf32> to vector<8x256xf32>
    %c1 = arith.constant 1 : index
    %c0_4 = arith.constant 0 : index
    %5 = vector.load %arg3[%c1, %c0_4] : memref<9x256xf32, #tpu.memory_space<vmem>>, vector<1x256xf32>
    %6 = vector.shape_cast %5 : vector<1x256xf32> to vector<1x256xf32>
    %7 = vector.broadcast %6 : vector<1x256xf32> to vector<8x256xf32>
    %c2 = arith.constant 2 : index
    %c0_5 = arith.constant 0 : index
    %8 = vector.load %arg3[%c2, %c0_5] : memref<9x256xf32, #tpu.memory_space<vmem>>, vector<1x256xf32>
    %9 = vector.shape_cast %8 : vector<1x256xf32> to vector<1x256xf32>
    %10 = vector.broadcast %9 : vector<1x256xf32> to vector<8x256xf32>
    %c3 = arith.constant 3 : index
    %c0_6 = arith.constant 0 : index
    %11 = vector.load %arg3[%c3, %c0_6] : memref<9x256xf32, #tpu.memory_space<vmem>>, vector<1x256xf32>
    %12 = vector.shape_cast %11 : vector<1x256xf32> to vector<1x256xf32>
    %13 = vector.broadcast %12 : vector<1x256xf32> to vector<8x256xf32>
    %c5 = arith.constant 5 : index
    %c0_7 = arith.constant 0 : index
    %14 = vector.load %arg3[%c5, %c0_7] : memref<9x256xf32, #tpu.memory_space<vmem>>, vector<1x256xf32>
    %15 = vector.shape_cast %14 : vector<1x256xf32> to vector<1x256xf32>
    %16 = vector.broadcast %15 : vector<1x256xf32> to vector<8x256xf32>
    %c6 = arith.constant 6 : index
    %c0_8 = arith.constant 0 : index
    %17 = vector.load %arg3[%c6, %c0_8] : memref<9x256xf32, #tpu.memory_space<vmem>>, vector<1x256xf32>
    %18 = vector.shape_cast %17 : vector<1x256xf32> to vector<1x256xf32>
    %19 = vector.broadcast %18 : vector<1x256xf32> to vector<8x256xf32>
    %c7 = arith.constant 7 : index
    %c0_9 = arith.constant 0 : index
    %20 = vector.load %arg3[%c7, %c0_9] : memref<9x256xf32, #tpu.memory_space<vmem>>, vector<1x256xf32>
    %21 = vector.shape_cast %20 : vector<1x256xf32> to vector<1x256xf32>
    %22 = vector.broadcast %21 : vector<1x256xf32> to vector<8x256xf32>
    %c8 = arith.constant 8 : index
    %c0_10 = arith.constant 0 : index
    %23 = vector.load %arg3[%c8, %c0_10] : memref<9x256xf32, #tpu.memory_space<vmem>>, vector<1x256xf32>
    %24 = vector.shape_cast %23 : vector<1x256xf32> to vector<1x256xf32>
    %25 = vector.broadcast %24 : vector<1x256xf32> to vector<8x256xf32>
    %c17_i32 = arith.constant 17 : i32
    %26 = tpu.dynamic_rotate %1 by %c17_i32 dim 1 : vector<8x256xf32>, i32 -> vector<8x256xf32>
    %27 = arith.mulf %26, %4 : vector<8x256xf32>
    %c16_i32 = arith.constant 16 : i32
    %28 = tpu.dynamic_rotate %1 by %c16_i32 dim 1 : vector<8x256xf32>, i32 -> vector<8x256xf32>
    %29 = arith.mulf %28, %7 : vector<8x256xf32>
    %c15_i32 = arith.constant 15 : i32
    %30 = tpu.dynamic_rotate %1 by %c15_i32 dim 1 : vector<8x256xf32>, i32 -> vector<8x256xf32>
    %31 = arith.mulf %30, %10 : vector<8x256xf32>
    %c1_i32 = arith.constant 1 : i32
    %32 = tpu.dynamic_rotate %1 by %c1_i32 dim 1 : vector<8x256xf32>, i32 -> vector<8x256xf32>
    %33 = arith.mulf %32, %13 : vector<8x256xf32>
    %c255_i32 = arith.constant 255 : i32
    %34 = tpu.dynamic_rotate %1 by %c255_i32 dim 1 : vector<8x256xf32>, i32 -> vector<8x256xf32>
    %35 = arith.mulf %34, %16 : vector<8x256xf32>
    %c241_i32 = arith.constant 241 : i32
    %36 = tpu.dynamic_rotate %1 by %c241_i32 dim 1 : vector<8x256xf32>, i32 -> vector<8x256xf32>
    %37 = arith.mulf %36, %19 : vector<8x256xf32>
    %c240_i32 = arith.constant 240 : i32
    %38 = tpu.dynamic_rotate %1 by %c240_i32 dim 1 : vector<8x256xf32>, i32 -> vector<8x256xf32>
    %39 = arith.mulf %38, %22 : vector<8x256xf32>
    %c239_i32 = arith.constant 239 : i32
    %40 = tpu.dynamic_rotate %1 by %c239_i32 dim 1 : vector<8x256xf32>, i32 -> vector<8x256xf32>
    %41 = arith.mulf %40, %25 : vector<8x256xf32>
    %42 = tpu.concatenate %27, %29, %31, %33, %1, %35, %37, %39, %41 in 0 : vector<8x256xf32>, vector<8x256xf32>, vector<8x256xf32>, vector<8x256xf32>, vector<8x256xf32>, vector<8x256xf32>, vector<8x256xf32>, vector<8x256xf32>, vector<8x256xf32> -> vector<72x256xf32>
    %43 = arith.truncf %42 : vector<72x256xf32> to vector<72x256xbf16>
    %c0_11 = arith.constant 0 : index
    %c0_12 = arith.constant 0 : index
    %44 = vector.load %arg4[%c0_11, %c0_12] : memref<8x72xbf16, #tpu.memory_space<vmem>>, vector<8x72xbf16>
    %cst = arith.constant dense<0.000000e+00> : vector<8x256xf32>
    %45 = tpu.matmul %44, %43, %cst {dimension_numbers = #tpu.dot_dimension_numbers<[1], [0], [0], [1], [0, 0, 1, 1], [], []>} : vector<8x72xbf16>, vector<72x256xbf16>, vector<8x256xf32> -> vector<8x256xf32>
    %c0_13 = arith.constant 0 : index
    %c0_14 = arith.constant 0 : index
    %c0_15 = arith.constant 0 : index
    %46 = vector.load %arg2[%c0_13, %c0_14, %c0_15] : memref<1x8x1xf32, #tpu.memory_space<vmem>>, vector<1x8x1xf32>
    %47 = vector.shape_cast %46 : vector<1x8x1xf32> to vector<8x1xf32>
    %48 = vector.broadcast %47 : vector<8x1xf32> to vector<8x256xf32>
    %49 = arith.addf %45, %48 : vector<8x256xf32>
    %cst_16 = arith.constant 0.000000e+00 : f32
    %50 = vector.broadcast %cst_16 : f32 to vector<8x256xf32>
    %51 = arith.maximumf %49, %50 : vector<8x256xf32>
    %c17_i32_17 = arith.constant 17 : i32
    %52 = tpu.dynamic_rotate %51 by %c17_i32_17 dim 1 : vector<8x256xf32>, i32 -> vector<8x256xf32>
    %53 = arith.mulf %52, %4 : vector<8x256xf32>
    %c16_i32_18 = arith.constant 16 : i32
    %54 = tpu.dynamic_rotate %51 by %c16_i32_18 dim 1 : vector<8x256xf32>, i32 -> vector<8x256xf32>
    %55 = arith.mulf %54, %7 : vector<8x256xf32>
    %c15_i32_19 = arith.constant 15 : i32
    %56 = tpu.dynamic_rotate %51 by %c15_i32_19 dim 1 : vector<8x256xf32>, i32 -> vector<8x256xf32>
    %57 = arith.mulf %56, %10 : vector<8x256xf32>
    %c1_i32_20 = arith.constant 1 : i32
    %58 = tpu.dynamic_rotate %51 by %c1_i32_20 dim 1 : vector<8x256xf32>, i32 -> vector<8x256xf32>
    %59 = arith.mulf %58, %13 : vector<8x256xf32>
    %c255_i32_21 = arith.constant 255 : i32
    %60 = tpu.dynamic_rotate %51 by %c255_i32_21 dim 1 : vector<8x256xf32>, i32 -> vector<8x256xf32>
    %61 = arith.mulf %60, %16 : vector<8x256xf32>
    %c241_i32_22 = arith.constant 241 : i32
    %62 = tpu.dynamic_rotate %51 by %c241_i32_22 dim 1 : vector<8x256xf32>, i32 -> vector<8x256xf32>
    %63 = arith.mulf %62, %19 : vector<8x256xf32>
    %c240_i32_23 = arith.constant 240 : i32
    %64 = tpu.dynamic_rotate %51 by %c240_i32_23 dim 1 : vector<8x256xf32>, i32 -> vector<8x256xf32>
    %65 = arith.mulf %64, %22 : vector<8x256xf32>
    %c239_i32_24 = arith.constant 239 : i32
    %66 = tpu.dynamic_rotate %51 by %c239_i32_24 dim 1 : vector<8x256xf32>, i32 -> vector<8x256xf32>
    %67 = arith.mulf %66, %25 : vector<8x256xf32>
    %68 = tpu.concatenate %53, %55, %57, %59, %51, %61, %63, %65, %67 in 0 : vector<8x256xf32>, vector<8x256xf32>, vector<8x256xf32>, vector<8x256xf32>, vector<8x256xf32>, vector<8x256xf32>, vector<8x256xf32>, vector<8x256xf32>, vector<8x256xf32> -> vector<72x256xf32>
    %69 = arith.truncf %68 : vector<72x256xf32> to vector<72x256xbf16>
    %c0_25 = arith.constant 0 : index
    %c0_26 = arith.constant 0 : index
    %70 = vector.load %arg5[%c0_25, %c0_26] : memref<8x72xbf16, #tpu.memory_space<vmem>>, vector<8x72xbf16>
    %cst_27 = arith.constant dense<0.000000e+00> : vector<8x256xf32>
    %71 = tpu.matmul %70, %69, %cst_27 {dimension_numbers = #tpu.dot_dimension_numbers<[1], [0], [0], [1], [0, 0, 1, 1], [], []>} : vector<8x72xbf16>, vector<72x256xbf16>, vector<8x256xf32> -> vector<8x256xf32>
    %c0_28 = arith.constant 0 : index
    %c0_29 = arith.constant 0 : index
    %72 = vector.load %arg6[%c0_28, %c0_29] : memref<8x8xbf16, #tpu.memory_space<vmem>>, vector<8x8xbf16>
    %73 = arith.truncf %1 : vector<8x256xf32> to vector<8x256xbf16>
    %cst_30 = arith.constant dense<0.000000e+00> : vector<8x256xf32>
    %74 = tpu.matmul %72, %73, %cst_30 {dimension_numbers = #tpu.dot_dimension_numbers<[1], [0], [0], [1], [0, 0, 1, 1], [], []>} : vector<8x8xbf16>, vector<8x256xbf16>, vector<8x256xf32> -> vector<8x256xf32>
    %75 = arith.addf %71, %74 : vector<8x256xf32>
    %c0_31 = arith.constant 0 : index
    %c0_32 = arith.constant 0 : index
    %76 = vector.load %arg7[%c0_31, %c0_32] : memref<8x1xf32, #tpu.memory_space<vmem>>, vector<8x1xf32>
    %77 = vector.broadcast %76 : vector<8x1xf32> to vector<8x256xf32>
    %78 = arith.addf %75, %77 : vector<8x256xf32>
    %c0_33 = arith.constant 0 : index
    %c0_34 = arith.constant 0 : index
    %c0_35 = arith.constant 0 : index
    %79 = vector.load %arg12[%c0_33, %c0_34, %c0_35] : memref<1x8x256xf32, #tpu.memory_space<vmem>>, vector<1x8x256xf32>
    %80 = vector.shape_cast %79 : vector<1x8x256xf32> to vector<8x256xf32>
    %81 = vector.shape_cast %78 : vector<8x256xf32> to vector<1x8x256xf32>
    tpu.vector_store %arg12[%c0_33, %c0_34, %c0_35], %81 {strides = array<i32>} : memref<1x8x256xf32, #tpu.memory_space<vmem>>, vector<1x8x256xf32>,
    %c255_i32_36 = arith.constant 255 : i32
    %82 = tpu.dynamic_rotate %78 by %c255_i32_36 dim 1 : vector<8x256xf32>, i32 -> vector<8x256xf32>
    %83 = arith.maximumf %78, %82 : vector<8x256xf32>
    %c240_i32_37 = arith.constant 240 : i32
    %84 = tpu.dynamic_rotate %78 by %c240_i32_37 dim 1 : vector<8x256xf32>, i32 -> vector<8x256xf32>
    %85 = arith.maximumf %83, %84 : vector<8x256xf32>
    %c239_i32_38 = arith.constant 239 : i32
    %86 = tpu.dynamic_rotate %78 by %c239_i32_38 dim 1 : vector<8x256xf32>, i32 -> vector<8x256xf32>
    %87 = arith.maximumf %85, %86 : vector<8x256xf32>
    %c0_39 = arith.constant 0 : index
    %c0_40 = arith.constant 0 : index
    %88 = vector.load %arg8[%c0_39, %c0_40] : memref<4x8xf32, #tpu.memory_space<vmem>>, vector<4x8xf32>
    %cst_41 = arith.constant dense<0.000000e+00> : vector<4x256xf32>
    %89 = tpu.matmul %88, %87, %cst_41 {dimension_numbers = #tpu.dot_dimension_numbers<[1], [0], [0], [1], [0, 0, 1, 1], [], []>} : vector<4x8xf32>, vector<8x256xf32>, vector<4x256xf32> -> vector<4x256xf32>
    %c0_42 = arith.constant 0 : index
    %c0_43 = arith.constant 0 : index
    %90 = vector.load %arg9[%c0_42, %c0_43] : memref<4x8xf32, #tpu.memory_space<vmem>>, vector<4x8xf32>
    %cst_44 = arith.constant dense<0.000000e+00> : vector<4x256xf32>
    %91 = tpu.matmul %90, %87, %cst_44 {dimension_numbers = #tpu.dot_dimension_numbers<[1], [0], [0], [1], [0, 0, 1, 1], [], []>} : vector<4x8xf32>, vector<8x256xf32>, vector<4x256xf32> -> vector<4x256xf32>
    %c0_45 = arith.constant 0 : index
    %c0_46 = arith.constant 0 : index
    %92 = vector.load %arg10[%c0_45, %c0_46] : memref<256x128xf32, #tpu.memory_space<vmem>>, vector<256x128xf32>
    %cst_47 = arith.constant dense<0.000000e+00> : vector<4x128xf32>
    %93 = tpu.matmul %89, %92, %cst_47 {dimension_numbers = #tpu.dot_dimension_numbers<[1], [0], [0], [1], [0, 0, 1, 1], [], []>} : vector<4x256xf32>, vector<256x128xf32>, vector<4x128xf32> -> vector<4x128xf32>
    %c0_48 = arith.constant 0 : index
    %c0_49 = arith.constant 0 : index
    %94 = vector.load %arg11[%c0_48, %c0_49] : memref<256x128xf32, #tpu.memory_space<vmem>>, vector<256x128xf32>
    %cst_50 = arith.constant dense<0.000000e+00> : vector<4x128xf32>
    %95 = tpu.matmul %91, %94, %cst_50 {dimension_numbers = #tpu.dot_dimension_numbers<[1], [0], [0], [1], [0, 0, 1, 1], [], []>} : vector<4x256xf32>, vector<256x128xf32>, vector<4x128xf32> -> vector<4x128xf32>
    %96 = arith.addf %93, %95 : vector<4x128xf32>
    %c0_51 = arith.constant 0 : index
    %c0_52 = arith.constant 0 : index
    %c0_53 = arith.constant 0 : index
    %97 = vector.load %arg13[%c0_51, %c0_52, %c0_53] : memref<1x4x128xf32, #tpu.memory_space<vmem>>, vector<1x4x128xf32>
    %98 = vector.shape_cast %97 : vector<1x4x128xf32> to vector<4x128xf32>
    %99 = vector.shape_cast %96 : vector<4x128xf32> to vector<1x4x128xf32>
    tpu.vector_store %arg13[%c0_51, %c0_52, %c0_53], %99 {strides = array<i32>} : memref<1x4x128xf32, #tpu.memory_space<vmem>>, vector<1x4x128xf32>,
    return
  }
  func.func @transform_0(%arg0: i32) -> (i32, i32, i32) {
    %c0_i32 = arith.constant 0 : i32
    %c0_i32_0 = arith.constant 0 : i32
    %c0_i32_1 = arith.constant 0 : i32
    return %arg0, %c0_i32, %c0_i32_0 : i32, i32, i32
  }
  func.func @transform_1(%arg0: i32) -> (i32, i32, i32) {
    %c0_i32 = arith.constant 0 : i32
    %c0_i32_0 = arith.constant 0 : i32
    %c0_i32_1 = arith.constant 0 : i32
    return %arg0, %c0_i32, %c0_i32_0 : i32, i32, i32
  }
  func.func @transform_2(%arg0: i32) -> (i32, i32) {
    %c0_i32 = arith.constant 0 : i32
    %c0_i32_0 = arith.constant 0 : i32
    %c0_i32_1 = arith.constant 0 : i32
    return %c0_i32, %c0_i32_0 : i32, i32
  }
  func.func @transform_3(%arg0: i32) -> (i32, i32) {
    %c0_i32 = arith.constant 0 : i32
    %c0_i32_0 = arith.constant 0 : i32
    %c0_i32_1 = arith.constant 0 : i32
    return %c0_i32, %c0_i32_0 : i32, i32
  }
  func.func @transform_4(%arg0: i32) -> (i32, i32) {
    %c0_i32 = arith.constant 0 : i32
    %c0_i32_0 = arith.constant 0 : i32
    %c0_i32_1 = arith.constant 0 : i32
    return %c0_i32, %c0_i32_0 : i32, i32
  }
  func.func @transform_5(%arg0: i32) -> (i32, i32) {
    %c0_i32 = arith.constant 0 : i32
    %c0_i32_0 = arith.constant 0 : i32
    %c0_i32_1 = arith.constant 0 : i32
    return %c0_i32, %c0_i32_0 : i32, i32
  }
  func.func @transform_6(%arg0: i32) -> (i32, i32) {
    %c0_i32 = arith.constant 0 : i32
    %c0_i32_0 = arith.constant 0 : i32
    %c0_i32_1 = arith.constant 0 : i32
    return %c0_i32, %c0_i32_0 : i32, i32
  }
  func.func @transform_7(%arg0: i32) -> (i32, i32) {
    %c0_i32 = arith.constant 0 : i32
    %c0_i32_0 = arith.constant 0 : i32
    %c0_i32_1 = arith.constant 0 : i32
    return %c0_i32, %c0_i32_0 : i32, i32
  }
  func.func @transform_8(%arg0: i32) -> (i32, i32) {
    %c0_i32 = arith.constant 0 : i32
    %c0_i32_0 = arith.constant 0 : i32
    %c0_i32_1 = arith.constant 0 : i32
    return %c0_i32, %c0_i32_0 : i32, i32
  }
  func.func @transform_9(%arg0: i32) -> (i32, i32) {
    %c0_i32 = arith.constant 0 : i32
    %c0_i32_0 = arith.constant 0 : i32
    %c0_i32_1 = arith.constant 0 : i32
    return %c0_i32, %c0_i32_0 : i32, i32
  }
  func.func @transform_10(%arg0: i32) -> (i32, i32) {
    %c0_i32 = arith.constant 0 : i32
    %c0_i32_0 = arith.constant 0 : i32
    %c0_i32_1 = arith.constant 0 : i32
    return %c0_i32, %c0_i32_0 : i32, i32
  }
  func.func @transform_11(%arg0: i32) -> (i32, i32, i32) {
    %c0_i32 = arith.constant 0 : i32
    %c0_i32_0 = arith.constant 0 : i32
    %c0_i32_1 = arith.constant 0 : i32
    return %arg0, %c0_i32, %c0_i32_0 : i32, i32, i32
  }
  func.func @transform_12(%arg0: i32) -> (i32, i32, i32) {
    %c0_i32 = arith.constant 0 : i32
    %c0_i32_0 = arith.constant 0 : i32
    %c0_i32_1 = arith.constant 0 : i32
    return %arg0, %c0_i32, %c0_i32_0 : i32, i32, i32
  }
}

</mosaic_0001>

<bundles_post_ra>
// kernel: forward.1
= control target key start
LH: loop header
LB: loop body
LE: loop exit
PB: predicated region body
PF: predicated region fallthrough
CT: control target
= control target key end

     0   :  { %18 = vsyncpa [#allocation3], 0  ;;  %s2198_s0 = inlined_call_operand.vmem [shape: f32[2,8,256], index: 0, kind: input, shape index: {}]   ;;  %s2199_s1 = inlined_call_operand.vmem [shape: f32[2,8,1], index: 1, kind: input, shape index: {}]   ;;  %s2200_s2 = inlined_call_operand.vmem [shape: f32[9,256], index: 2, kind: input, shape index: {}]   ;;  %s2201_s3 = inlined_call_operand.vmem [shape: bf16[8,72], index: 3, kind: input, shape index: {}]   ;;  %s2202_s4 = inlined_call_operand.vmem [shape: bf16[8,72], index: 4, kind: input, shape index: {}]   ;;  %s2203_s5 = inlined_call_operand.vmem [shape: bf16[8,8], index: 5, kind: input, shape index: {}]   ;;  %s2204_s6 = inlined_call_operand.vmem [shape: f32[8,1], index: 6, kind: input, shape index: {}]   ;;  %s2205_s7 = inlined_call_operand.vmem [shape: f32[4,8], index: 7, kind: input, shape index: {}]   ;;  %s2206_s8 = inlined_call_operand.vmem [shape: f32[4,8], index: 8, kind: input, shape index: {}]   ;;  %s2207_s9 = inlined_call_operand.hbm [shape: f32[256,128], index: 9, kind: input, shape index: {}]   ;;  %s2208_s10 = inlined_call_operand.hbm [shape: f32[256,128], index: 10, kind: input, shape index: {}]   ;;  %s2209_s11 = inlined_call_operand.vmem [shape: f32[2,8,256], index: 11, kind: output, shape index: {0}]   ;;  %s2210_s12 = inlined_call_operand.vmem [shape: f32[2,4,128], index: 12, kind: output, shape index: {1}]  }
   0x1   :  { %19 = vsyncpa [#allocation5], 0  ;;  %s1772_s21 = smov 0  }
   0x2 LB: > { %s1778_s22 = sadd.s32 4294967295, %s1691_s21   ;;  %p1413_p0 = scmp.ge.s32.totalorder %s1691_s21, 1  ;;  %s1691_s21 = sphi %s1772_s21, %s25_s21  }
   0x3   : > { %p323_p1 = scmp.lt.s32.totalorder %s1691_s21, 3  ;;  %s1693_s23 = smov [#allocation2]  }
   0x4   : > { %s356_s24 = sshll.u32 %s1693_s23, 4  ;;  %p2211_p3 = scmp.eq.s32.totalorder %s1778_s22, 0  ;;  %s357_s24 = int_to_ptr.vmem [resolvable:$true] %s356_s24 }
   0x5   : > { %p1782_p2 = pnand %p1413_p0, %p323_p1  ;;  %s1694_s26 = smov [#allocation4]  }
   0x6   : > { %s369_s27 = sshll.u32 %s1694_s26, 4  ;;  %s1621_s13 = scalar_lea.hbm %s2207_s9, 4096  ;;  %s1795_s27 = int_to_ptr.vmem [resolvable:$true] %s369_s27 }
   0x7   : > { %s2213_s25 = scalar_select %p1782_p2, 1, 0 }
   0x8   : > { %p1587_p4 = pneg %p1782_p2  ;;  %p1622_p6 = scmp.ne.s32.totalorder %s2207_s9, %s1621_s13 }
   0x9   : > { %p1628_p10 = scmp.lt.u32.totalorder %s1621_s13, %s2207_s9 }
   0xa   : > { %p1791_p5 = pnand %p2211_p3, %p1587_p4 }
   0xc   : > { %p1623_p7 = pneg %p1791_p5 }
   0xe   : > { %p1624_p8 = pnand %p1623_p7, %p1622_p6 }
  0x10   : > { %p1625_p9 = pneg %p1624_p8 }
  0x12   : > { %p1630_p11 = pnand %p1628_p10, %p1625_p9 }
  0x14   : > { %1633 = shalt.err (!%p1630_p11)
}
  0x15   : > { %s1634_s18 = scalar_lea.vmem %s357_s24, 4096  ;;  %p1642_p1 = scmp.lt.s32.totalorder %s357_s24, %s357_s24 }
  0x16   : > { %p1635_p12 = scmp.ne.s32.totalorder %s357_s24, %s1634_s18  ;;  %p1643_p4 = scmp.lt.s32.totalorder %s1634_s18, %s1634_s18 }
  0x18   : > { %p1637_p13 = pnand %p1635_p12, %p1623_p7  ;;  %p1644_p3 = por %p1643_p4, %p1642_p1 }
  0x1a   : > { %p1638_p0 = pneg %p1637_p13 }
  0x1c   : > { %p1645_p2 = pnand %p1644_p3, %p1638_p0 }
  0x1e   : > { %1648 = shalt.err (!%p1645_p2)
}
  0x1f   : > { %s1695_s19 = smov 128   ;;  %s1696_s20 = smov 8  }
  0x20   : > { %1590 = dma.hbm_to_vmem [thread:$0]  (!%p1791_p5), %s2207_s9, 4096, %s357_s24, [#allocation3], %s1695_s19, %s1695_s19, %s1696_s20  }
  0x21   : > { %s1649_s13 = scalar_lea.hbm %s2208_s10, 4096 }
  0x22   : > { %p1650_p6 = scmp.ne.s32.totalorder %s2208_s10, %s1649_s13  ;;  %p1656_p8 = scmp.lt.u32.totalorder %s1649_s13, %s2208_s10 }
  0x24   : > { %p1652_p2 = pnand %p1650_p6, %p1623_p7 }
  0x26   : > { %p1653_p3 = pneg %p1652_p2 }
  0x28   : > { %p1658_p9 = pnand %p1656_p8, %p1653_p3 }
  0x2a   : > { %1661 = shalt.err (!%p1658_p9)
}
  0x2b   : > { %s1662_s24 = scalar_lea.vmem %s1795_s27, 4096  ;;  %p1670_p13 = scmp.lt.s32.totalorder %s1795_s27, %s1795_s27 }
  0x2c   : > { %p1663_p10 = scmp.ne.s32.totalorder %s1795_s27, %s1662_s24  ;;  %p1671_p0 = scmp.lt.s32.totalorder %s1662_s24, %s1662_s24 }
  0x2e   : > { %p1665_p11 = pnand %p1663_p10, %p1623_p7  ;;  %p1672_p1 = por %p1671_p0, %p1670_p13 }
  0x30   : > { %p1666_p12 = pneg %p1665_p11 }
  0x32   : > { %p1673_p4 = pnand %p1672_p1, %p1666_p12 }
  0x34   : > { %1676 = shalt.err (!%p1673_p4)
}
  0x35   : > { %1593 = dma.hbm_to_vmem [thread:$0]  (!%p1791_p5), %s2208_s10, 4096, %s1795_s27, [#allocation5], %s1695_s19, %s1695_s19, %s1696_s20  }
  0x36   : > { %p2215_p6 = scmp.ne.s32.totalorder %s2213_s25, 0 }
  0x37   : > { %p2216_p2 = scmp.eq.s32.totalorder (!%p2215_p6), %s1778_s22, 0 }
  0x38   : > { %400 = sbr.rel (%p2215_p6) target bundleno = 1378 (0x562), region = 64 }
  0x3f   : > { %1682 = dma.done.wait (%p2216_p2), [#allocation3], 4096   ;;  %p2217_p7 = pmov %p2216_p2 }
  0x40   : > { %p2218_p3 = pmov %p2216_p2 }
  0x41   : > { %1684 = vsyncadd (%p2217_p7), [#allocation3], 4294963200 }
  0x42   : > { %1686 = dma.done.wait (%p2218_p3), [#allocation5], 4096   ;;  %p2219_p8 = pmov %p2216_p2 }
  0x43   : > { %p454_p9 = scmp.lt.s32.totalorder %s1778_s22, 1  ;;  %s1697_s20 = smov 16   ;;  %v1703_v2 = vmov 0   ;;  %v477_v4 = vlaneseq  ;;  %v1426_v9 = vld [vmem:[%s2200_s2 + $0x1] ss:$8 sm:$0x3] }
  0x44   : > { %1688 = vsyncadd (%p2219_p8), [#allocation5], 4294963200  ;;  %s1698_s26 = smov 17   ;;  %s1699_s29 = smov 15   ;;  %712 = vmatprep.mubr.bf16.mxu0 %v1703_v2  ;;  %1620 = vset.pattern.permute.xlu0 %v1703_v2  ;;  %vm673_vm8 = vcmask 1043456   ;;  %vm669_vm9 = vcmask 588800  }
  0x45   : > { %s2221_s22 = smov (!%p454_p9, %s1778_s22), 1  ;;  %s1700_s30 = smov 1   ;;  %843 = vmatprep.mubr.bf16.mxu1 %v1703_v2  ;;  %v478_v5 = vshrl.u32 %v477_v4, 7  ;;  %v1907_v6 = vand.u32 127, %v477_v4  ;;  %vm801_vm10 = vcmask 64512  }
  0x46   : > { %s1443_s25 = sshll.u32 %s2221_s22, 4  ;;  %s1701_s13 = smov 127   ;;  %v475_v10 = vld [vmem:[%s2200_s2] ss:$8 sm:$0x3] }
  0x47   : > { %s458_s19 = scalar_lea.vmem %s2198_s0, %s1443_s25  ;;  %s1702_s14 = smov 113   ;;  %v1909_v7 = vsub.s32 0, %v478_v5  ;;  %v1911_v8 = vsub.s32 1, %v478_v5  ;;  %vm593_vm0 = vcmp.lt.s32.totalorder %v1907_v6, 16  ;;  %vm584_vm1 = vcmp.lt.s32.totalorder %v1907_v6, 17 }
  0x48   : > { %v1864_v0 = vld [vmem:[%s458_s19] sm:$0xff]  ;;  %v1870_v1 = vld [vmem:[%s458_s19 + $0x8] sm:$0xff]  ;;  %s1704_s15 = smov 112   ;;  %s1422_s16 = sshll.u32 %s2221_s22, 3  ;;  %vm602_vm2 = vcmp.lt.s32.totalorder %v1907_v6, 15  ;;  %vm611_vm3 = vcmp.lt.s32.totalorder %v1907_v6, 1 }
  0x49   : > { %589 = vrot.lane.b32.xlu1 %v1864_v0, %s1697_s20  ;;  %578 = vrot.lane.b32.xlu0 %v1864_v0, %s1698_s26  ;;  %s462_s18 = scalar_lea.vmem %s2199_s1, %s1422_s16  ;;  %s1705_s23 = smov 111   ;;  %v1922_v13 = vrot.slane %v1426_v9, %v1909_v7  ;;  %v1925_v14 = vrot.slane %v475_v10, %v1909_v7  ;;  %v1928_v15 = vrot.slane %v475_v10, %v1911_v8  ;;  %v1427_v27 = vld [vmem:[%s2200_s2 + $0x2] ss:$8 sm:$0x3]  ;;  %vm620_vm4 = vcmp.lt.s32.totalorder %v1907_v6, 127 }
  0x4a   : > { %v663_v3 = vld [vmem:[%s462_s18] sm:$0xff]  ;;  %v1931_v16 = vrot.slane %v1426_v9, %v1911_v8  ;;  %v1957_v34 = vrot.slane %v1427_v27, %v1909_v7  ;;  %v1960_v35 = vrot.slane %v1427_v27, %v1911_v8  ;;  %vm629_vm5 = vcmp.lt.s32.totalorder %v1907_v6, 113  ;;  %v1432_v4 = vld [vmem:[%s2200_s2 + $0x10] ss:$8 sm:$0x3]  ;;  %s467_s27 = scalar_lea.vmem %s2209_s11, %s1443_s25  ;;  %s1425_s28 = sshll.u32 %s2221_s22, 2 }
  0x4b   : > { %v1428_v28 = vld [vmem:[%s2200_s2 + $0x3] ss:$8 sm:$0x3]  ;;  %v1429_v33 = vld [vmem:[%s2200_s2 + $0x5] ss:$8 sm:$0x3]  ;;  %s471_s17 = scalar_lea.vmem %s2210_s12, %s1425_s28 }
  0x4c   : > { %v1963_v36 = vrot.slane %v1428_v28, %v1909_v7  ;;  %v1966_v37 = vrot.slane %v1428_v28, %v1911_v8  ;;  %v1973_v42 = vrot.slane %v1429_v33, %v1909_v7  ;;  %v1980_v45 = vrot.slane %v1429_v33, %v1911_v8  ;;  %v1430_v58 = vld [vmem:[%s2200_s2 + $0x6] ss:$8 sm:$0x3]  ;;  %v1431_v59 = vld [vmem:[%s2200_s2 + $0x7] ss:$8 sm:$0x3] }
  0x4d   : > { %591 = vrot.lane.b32.xlu1 %v1870_v1, %s1697_s20  ;;  %580 = vrot.lane.b32.xlu0 %v1870_v1, %s1698_s26  ;;  %v2009_v5 = vrot.slane %v1430_v58, %v1911_v8  ;;  %v2012_v9 = vrot.slane %v1431_v59, %v1909_v7  ;;  %v2015_v10 = vrot.slane %v1431_v59, %v1911_v8  ;;  %vm638_vm6 = vcmp.lt.s32.totalorder %v1907_v6, 112 }
  0x4e   : > { %vm647_vm7 = vcmp.lt.s32.totalorder %v1907_v6, 111  ;;  %v1011_v6 = vld [vmem:[%s2206_s8] sm:$0xf] }
  0x51   : > { %600 = vrot.lane.b32.xlu1 %v1870_v1, %s1699_s29  ;;  %598 = vrot.lane.b32.xlu0 %v1864_v0, %s1699_s29 }
  0x55   : > { %609 = vrot.lane.b32.xlu1 %v1870_v1, %s1700_s30  ;;  %607 = vrot.lane.b32.xlu0 %v1864_v0, %s1700_s30 }
  0x59   : > { %618 = vrot.lane.b32.xlu1 %v1870_v1, %s1701_s13  ;;  %616 = vrot.lane.b32.xlu0 %v1864_v0, %s1701_s13 }
  0x5d   : > { %627 = vrot.lane.b32.xlu1 %v1870_v1, %s1702_s14  ;;  %625 = vrot.lane.b32.xlu0 %v1864_v0, %s1702_s14 }
  0x61   : > { %636 = vrot.lane.b32.xlu1 %v1870_v1, %s1704_s15  ;;  %634 = vrot.lane.b32.xlu0 %v1864_v0, %s1704_s15 }
  0x65   : > { %645 = vrot.lane.b32.xlu1 %v1870_v1, %s1705_s23  ;;  %643 = vrot.lane.b32.xlu0 %v1864_v0, %s1705_s23 }
  0x69   : > { %666 = vperm.xlu0 %1620, %v663_v3   ;;  %v2003_v3 = vrot.slane %v1430_v58, %v1909_v7 }
  0xbb   : > { %v590_v11 = vpop.permute.xlu1 %589  ;;  %v579_v12 = vpop.permute.xlu0 %578 }
  0xbf   : > { %v592_v17 = vpop.permute.xlu1 %591  ;;  %v581_v18 = vpop.permute.xlu0 %580 }
  0xc0   : > { %v594_v19 = vsel %vm593_vm0, %v590_v11, %v592_v17  ;;  %v595_v20 = vsel %vm593_vm0, %v592_v17, %v590_v11  ;;  %v585_v21 = vsel %vm584_vm1, %v579_v12, %v581_v18  ;;  %v586_v22 = vsel %vm584_vm1, %v581_v18, %v579_v12 }
  0xc1   : > { %v596_v23 = vmul.f32 %v595_v20, %v1922_v13  ;;  %v587_v24 = vmul.f32 %v586_v22, %v1925_v14  ;;  %v588_v25 = vmul.f32 %v585_v21, %v1928_v15  ;;  %v597_v26 = vmul.f32 %v594_v19, %v1931_v16 }
  0xc2   : > { %v2023_v19 = vrot.slane %v1432_v4, %v1909_v7  ;;  %v2030_v22 = vrot.slane %v1432_v4, %v1911_v8 }
  0xc3   : > { %v601_v29 = vpop.permute.xlu1 %600  ;;  %v599_v30 = vpop.permute.xlu0 %598  ;;  %v653_v31 = vpack.c.bf16 %v597_v26, %v588_v25  ;;  %v652_v32 = vpack.c.bf16 %v596_v23, %v587_v24 }
  0xc4   : > { %v603_v38 = vsel %vm602_vm2, %v599_v30, %v601_v29  ;;  %v604_v39 = vsel %vm602_vm2, %v601_v29, %v599_v30 }
  0xc5   : > { %680 = vmatprep.subr.bf16.mxu0 %v653_v31  ;;  %v605_v46 = vmul.f32 %v604_v39, %v1957_v34  ;;  %v606_v47 = vmul.f32 %v603_v38, %v1960_v35 }
  0xc6   : > { %681 = vmatpush1.bf16.msra.mxu0 %v652_v32 }
  0xc7   : > { %v610_v40 = vpop.permute.xlu1 %609  ;;  %v608_v41 = vpop.permute.xlu0 %607 }
  0xc8   : > { %v612_v43 = vsel %vm611_vm3, %v608_v41, %v610_v40  ;;  %v613_v44 = vsel %vm611_vm3, %v610_v40, %v608_v41  ;;  %v662_v40 = vld [vmem:[%s2201_s3] sm:$0xf] }
  0xc9   : > { %v614_v48 = vmul.f32 %v613_v44, %v1963_v36  ;;  %v615_v49 = vmul.f32 %v612_v43, %v1966_v37  ;;  %v800_v43 = vpack.c.bf16 %v1870_v1, %v1870_v1  ;;  %v799_v44 = vpack.c.bf16 %v1864_v0, %v1864_v0 }
  0xcb   : > { %v619_v50 = vpop.permute.xlu1 %618  ;;  %v617_v51 = vpop.permute.xlu0 %616  ;;  %v655_v52 = vpack.c.bf16 %v615_v49, %v606_v47  ;;  %v654_v53 = vpack.c.bf16 %v614_v48, %v605_v46  ;;  %1435 = vmatprep.subr.msk.bf16.mxu1 %vm673_vm8, %v800_v43  ;;  %v806_v49 = vsel %vm673_vm8, %v799_v44, 0 }
  0xcc   : > { %v621_v54 = vsel %vm620_vm4, %v617_v51, %v619_v50  ;;  %v622_v55 = vsel %vm620_vm4, %v619_v50, %v617_v51  ;;  %812 = vmatpush1.bf16.msra.mxu1 %v806_v49 }
  0xcd   : > { %v623_v56 = vmul.f32 %v621_v54, %v1973_v42  ;;  %v624_v57 = vmul.f32 %v622_v55, %v1980_v45  ;;  %682 = vmatprep.subr.bf16.mxu0 %v655_v52 }
  0xce   : > { %683 = vmatpush1.bf16.msra.mxu0 %v654_v53 }
  0xcf   : > { %v628_v60 = vpop.permute.xlu1 %627  ;;  %v626_v61 = vpop.permute.xlu0 %625  ;;  %v657_v62 = vpack.c.bf16 %v624_v57, %v1870_v1  ;;  %v656_v63 = vpack.c.bf16 %v623_v56, %v1864_v0  ;;  %v798_v0 = vld [vmem:[%s2203_s5] sm:$0xf] }
  0xd0   : > { %v630_v11 = vsel %vm629_vm5, %v626_v61, %v628_v60  ;;  %v631_v12 = vsel %vm629_vm5, %v628_v60, %v626_v61  ;;  %1436 = vmatmul.mubr.msk.bf16.vlgmr.msra.gmra.mrb[0].mxu1 %vm801_vm10, %v798_v0 }
  0xd1   : > { %684 = vmatprep.subr.bf16.mxu0 %v657_v62  ;;  %v632_v23 = vmul.f32 %v630_v11, %v2003_v3  ;;  %v633_v24 = vmul.f32 %v631_v12, %v2009_v5  ;;  %893 = vmatprep.mubr.bf16.mxu1 %v1703_v2  ;;  %v902_v2 = vld [vmem:[%s2204_s6] sm:$0xff] }
  0xd2   : > { %685 = vmatpush1.bf16.msra.mxu0 %v656_v63 }
  0xd3   : > { %v637_v17 = vpop.permute.xlu1 %636  ;;  %v635_v18 = vpop.permute.xlu0 %634 }
  0xd4   : > { %v639_v20 = vsel %vm638_vm6, %v635_v18, %v637_v17  ;;  %v640_v21 = vsel %vm638_vm6, %v637_v17, %v635_v18 }
  0xd5   : > { %v641_v25 = vmul.f32 %v639_v20, %v2012_v9  ;;  %v642_v7 = vmul.f32 %v640_v21, %v2015_v10 }
  0xd7   : > { %v646_v26 = vpop.permute.xlu1 %645  ;;  %v644_v27 = vpop.permute.xlu0 %643  ;;  %v659_v28 = vpack.c.bf16 %v642_v7, %v633_v24  ;;  %v658_v29 = vpack.c.bf16 %v641_v25, %v632_v23 }
  0xd8   : > { %v648_v30 = vsel %vm647_vm7, %v644_v27, %v646_v26  ;;  %v649_v8 = vsel %vm647_vm7, %v646_v26, %v644_v27 }
  0xd9   : > { %v650_v31 = vmul.f32 %v648_v30, %v2023_v19  ;;  %v651_v32 = vmul.f32 %v649_v8, %v2030_v22  ;;  %686 = vmatprep.subr.bf16.mxu0 %v659_v28 }
  0xda   : > { %687 = vmatpush1.bf16.msra.mxu0 %v658_v29 }
  0xdb   : > { %v660_v33 = vpack.c.bf16 %v650_v31, %v650_v31  ;;  %v661_v38 = vpack.c.bf16 %v651_v32, %v651_v32 }
  0xdd   : > { %1433 = vmatprep.subr.msk.bf16.mxu0 %vm673_vm8, %v661_v38  ;;  %v675_v39 = vsel %vm673_vm8, %v660_v33, 0 }
  0xde   : > { %689 = vmatpush1.bf16.msra.mxu0 %v675_v39 }
  0xe1   : > { %1434 = vmatmul.mubr.msk.bf16.vlgmr.msra.gmra.mrb[0].mxu0 %vm669_vm9, %v662_v40 }
  0xe8   : > { %v667_v41 = vpop.permute.xlu0 %666 }
 0x1b4   : > { %v714_v46 = vpop.f32.mrb[0].mxu0 }
 0x1b5   : > { %v715_v47 = vadd.f32 %v714_v46, %v667_v41  ;;  %v716_v48 = vpop.f32.mrb[1].mxu0 }
 0x1b6   : > { %v718_v50 = vpop.f32.mrb[2].mxu0  ;;  %v717_v52 = vadd.f32 %v716_v48, %v667_v41 }
 0x1b7   : > { %v2055_v51 = vmax.f32 %v715_v47, 0.0  ;;  %v719_v53 = vpop.f32.mrb[3].mxu0 }
 0x1b8   : > { %v722_v1 = vmax.f32 %v717_v52, 0.0 }
 0x1b9   : > { %731 = vrot.lane.b32.xlu0 %v2055_v51, %s1697_s20  ;;  %723 = vrot.lane.b32.xlu1 %v2055_v51, %s1698_s26 }
 0x1bd   : > { %739 = vrot.lane.b32.xlu0 %v2055_v51, %s1699_s29  ;;  %725 = vrot.lane.b32.xlu1 %v722_v1, %s1698_s26 }
 0x1c1   : > { %747 = vrot.lane.b32.xlu0 %v2055_v51, %s1700_s30  ;;  %733 = vrot.lane.b32.xlu1 %v722_v1, %s1697_s20 }
 0x1c5   : > { %755 = vrot.lane.b32.xlu0 %v2055_v51, %s1701_s13  ;;  %741 = vrot.lane.b32.xlu1 %v722_v1, %s1699_s29 }
 0x1c9   : > { %763 = vrot.lane.b32.xlu0 %v2055_v51, %s1702_s14  ;;  %749 = vrot.lane.b32.xlu1 %v722_v1, %s1700_s30 }
 0x1cd   : > { %771 = vrot.lane.b32.xlu0 %v2055_v51, %s1704_s15  ;;  %757 = vrot.lane.b32.xlu1 %v722_v1, %s1701_s13 }
 0x1d1   : > { %779 = vrot.lane.b32.xlu0 %v2055_v51, %s1705_s23  ;;  %765 = vrot.lane.b32.xlu1 %v722_v1, %s1702_s14 }
 0x1d5   : > { %905 = vperm.xlu0 %1620, %v902_v2   ;;  %773 = vrot.lane.b32.xlu1 %v722_v1, %s1704_s15  ;;  %v845_v2 = vpop.f32.mrb[0].mxu1 }
 0x1d9   : > { %781 = vrot.lane.b32.xlu1 %v722_v1, %s1705_s23 }
 0x22b   : > { %v732_v54 = vpop.permute.xlu0 %731  ;;  %v724_v55 = vpop.permute.xlu1 %723 }
 0x22f   : > { %v740_v56 = vpop.permute.xlu0 %739  ;;  %v726_v57 = vpop.permute.xlu1 %725 }
 0x230   : > { %v727_v58 = vsel %vm584_vm1, %v724_v55, %v726_v57  ;;  %v728_v59 = vsel %vm584_vm1, %v726_v57, %v724_v55 }
 0x231   : > { %v729_v4 = vmul.f32 %v728_v59, %v1925_v14  ;;  %v730_v11 = vmul.f32 %v727_v58, %v1928_v15 }
 0x233   : > { %v748_v60 = vpop.permute.xlu0 %747  ;;  %v734_v61 = vpop.permute.xlu1 %733 }
 0x234   : > { %v735_v62 = vsel %vm593_vm0, %v732_v54, %v734_v61  ;;  %v736_v63 = vsel %vm593_vm0, %v734_v61, %v732_v54 }
 0x235   : > { %v737_v12 = vmul.f32 %v736_v63, %v1922_v13  ;;  %v738_v17 = vmul.f32 %v735_v62, %v1931_v16 }
 0x237   : > { %v787_v18 = vpack.c.bf16 %v737_v12, %v729_v4  ;;  %v742_v20 = vpop.permute.xlu1 %741  ;;  %v788_v21 = vpack.c.bf16 %v738_v17, %v730_v11  ;;  %v756_v23 = vpop.permute.xlu0 %755  ;;  %v1706_v4 = vmov 0.0   ;;  %v1134_v11 = vld [vmem:[#allocation4 + $0x80] sm:$0xff]  ;;  %v1135_v12 = vld [vmem:[#allocation4 + $0x88] sm:$0xff] }
 0x238   : > { %v743_v24 = vsel %vm602_vm2, %v740_v56, %v742_v20  ;;  %v744_v25 = vsel %vm602_vm2, %v742_v20, %v740_v56  ;;  %1004 = vmatprep.mubr.f32.mxu0 %v1706_v4  ;;  %v1515_v17 = vpack.c.bf16 %v1135_v12, %v1134_v11  ;;  %v1119_v20 = vld [vmem:[#allocation4 + $0x8] sm:$0xff] }
 0x239   : > { %861 = vmatprep.subr.bf16.mxu1 %v788_v21  ;;  %v745_v15 = vmul.f32 %v744_v25, %v1957_v34  ;;  %v746_v16 = vmul.f32 %v743_v24, %v1960_v35  ;;  %v1137_v24 = vld [vmem:[#allocation4 + $0x98] sm:$0xff] }
 0x23a   : > { %862 = vmatpush1.bf16.msra.mxu1 %v787_v18  ;;  %v1118_v18 = vld [vmem:[#allocation4] sm:$0xff] }
 0x23b   : > { %v750_v7 = vpop.permute.xlu1 %749  ;;  %v764_v28 = vpop.permute.xlu0 %763  ;;  %v1517_v21 = vpack.c.bf16 %v1119_v20, %v1118_v18  ;;  %v1087_v18 = vld [vmem:[#allocation2 + $0x8] sm:$0xff]  ;;  %v1104_v20 = vld [vmem:[#allocation2 + $0x90] sm:$0xff] }
 0x23c   : > { %v751_v14 = vsel %vm611_vm3, %v748_v60, %v750_v7  ;;  %v752_v13 = vsel %vm611_vm3, %v750_v7, %v748_v60  ;;  %v1120_v7 = vld [vmem:[#allocation4 + $0x10] sm:$0xff] }
 0x23d   : > { %v753_v26 = vmul.f32 %v752_v13, %v1963_v36  ;;  %v754_v27 = vmul.f32 %v751_v14, %v1966_v37  ;;  %v1121_v14 = vld [vmem:[#allocation4 + $0x18] sm:$0xff] }
 0x23e   : > { %v1521_v13 = vpack.c.bf16 %v1121_v14, %v1120_v7  ;;  %v1089_v7 = vld [vmem:[#allocation2 + $0x18] sm:$0xff]  ;;  %v1106_v14 = vld [vmem:[#allocation2 + $0xa0] sm:$0xff] }
 0x23f   : > { %v789_v29 = vpack.c.bf16 %v753_v26, %v745_v15  ;;  %v758_v30 = vpop.permute.xlu1 %757  ;;  %v790_v8 = vpack.c.bf16 %v754_v27, %v746_v16  ;;  %v772_v38 = vpop.permute.xlu0 %771  ;;  %v1138_v15 = vld [vmem:[#allocation4 + $0xa0] sm:$0xff]  ;;  %v1139_v16 = vld [vmem:[#allocation4 + $0xa8] sm:$0xff] }
 0x240   : > { %v759_v31 = vsel %vm620_vm4, %v756_v23, %v758_v30  ;;  %v760_v32 = vsel %vm620_vm4, %v758_v30, %v756_v23  ;;  %v1136_v23 = vld [vmem:[#allocation4 + $0x90] sm:$0xff]  ;;  %v1523_v26 = vpack.c.bf16 %v1139_v16, %v1138_v15  ;;  %v1122_v27 = vld [vmem:[#allocation4 + $0x20] sm:$0xff] }
 0x241   : > { %v761_v33 = vmul.f32 %v759_v31, %v1973_v42  ;;  %v762_v34 = vmul.f32 %v760_v32, %v1980_v45  ;;  %863 = vmatprep.subr.bf16.mxu1 %v790_v8  ;;  %v1519_v25 = vpack.c.bf16 %v1137_v24, %v1136_v23  ;;  %v1140_v30 = vld [vmem:[#allocation4 + $0xb0] sm:$0xff]  ;;  %v1141_v8 = vld [vmem:[#allocation4 + $0xb8] sm:$0xff] }
 0x242   : > { %864 = vmatpush1.bf16.msra.mxu1 %v789_v29  ;;  %v1527_v31 = vpack.c.bf16 %v1141_v8, %v1140_v30  ;;  %v1124_v32 = vld [vmem:[#allocation4 + $0x30] sm:$0xff] }
 0x243   : > { %v791_v35 = vpack.c.bf16 %v761_v33, %v2055_v51  ;;  %v766_v36 = vpop.permute.xlu1 %765  ;;  %v792_v37 = vpack.c.bf16 %v762_v34, %v722_v1  ;;  %v780_v48 = vpop.permute.xlu0 %779  ;;  %v797_v1 = vld [vmem:[%s2202_s4] sm:$0xf]  ;;  %v1125_v33 = vld [vmem:[#allocation4 + $0x38] sm:$0xff]  ;;  %v1092_v8 = vld [vmem:[#allocation2 + $0x30] sm:$0xff] }
 0x244   : > { %v767_v39 = vsel %vm629_vm5, %v764_v28, %v766_v36  ;;  %v768_v40 = vsel %vm629_vm5, %v766_v36, %v764_v28  ;;  %v1123_v28 = vld [vmem:[#allocation4 + $0x28] sm:$0xff]  ;;  %v1529_v34 = vpack.c.bf16 %v1125_v33, %v1124_v32  ;;  %v1110_v32 = vld [vmem:[#allocation2 + $0xc0] sm:$0xff] }
 0x245   : > { %865 = vmatprep.subr.bf16.mxu1 %v792_v37  ;;  %v769_v43 = vmul.f32 %v767_v39, %v2003_v3  ;;  %v770_v44 = vmul.f32 %v768_v40, %v2009_v5  ;;  %v1525_v29 = vpack.c.bf16 %v1123_v28, %v1122_v27  ;;  %v1143_v36 = vld [vmem:[#allocation4 + $0xc8] sm:$0xff]  ;;  %v1109_v28 = vld [vmem:[#allocation2 + $0xb8] sm:$0xff] }
 0x246   : > { %866 = vmatpush1.bf16.msra.mxu1 %v791_v35  ;;  %v1142_v35 = vld [vmem:[#allocation4 + $0xc0] sm:$0xff]  ;;  %v1127_v39 = vld [vmem:[#allocation4 + $0x48] sm:$0xff] }
 0x247   : > { %v774_v41 = vpop.permute.xlu1 %773  ;;  %v1531_v37 = vpack.c.bf16 %v1143_v36, %v1142_v35  ;;  %v1091_v27 = vld [vmem:[#allocation2 + $0x28] sm:$0xff]  ;;  %v1094_v36 = vld [vmem:[#allocation2 + $0x40] sm:$0xff] }
 0x248   : > { %v775_v42 = vsel %vm638_vm6, %v772_v38, %v774_v41  ;;  %v776_v45 = vsel %vm638_vm6, %v774_v41, %v772_v38  ;;  %v1126_v38 = vld [vmem:[#allocation4 + $0x40] sm:$0xff]  ;;  %v1144_v41 = vld [vmem:[#allocation4 + $0xd0] sm:$0xff]  ;;  %v1111_v33 = vld [vmem:[#allocation2 + $0xc8] sm:$0xff] }
 0x249   : > { %v777_v46 = vmul.f32 %v775_v42, %v2012_v9  ;;  %v778_v47 = vmul.f32 %v776_v45, %v2015_v10  ;;  %v1533_v40 = vpack.c.bf16 %v1127_v39, %v1126_v38  ;;  %v1145_v42 = vld [vmem:[#allocation4 + $0xd8] sm:$0xff]  ;;  %v1563_v35 = vpack.c.bf16 %v1111_v33, %v1110_v32  ;;  %v1112_v38 = vld [vmem:[#allocation2 + $0xd0] sm:$0xff] }
 0x24a   : > { %v1535_v45 = vpack.c.bf16 %v1145_v42, %v1144_v41  ;;  %v1113_v39 = vld [vmem:[#allocation2 + $0xd8] sm:$0xff]  ;;  %v1096_v42 = vld [vmem:[#allocation2 + $0x50] sm:$0xff] }
 0x24b   : > { %v793_v49 = vpack.c.bf16 %v777_v46, %v769_v43  ;;  %v782_v50 = vpop.permute.xlu1 %781  ;;  %v794_v51 = vpack.c.bf16 %v778_v47, %v770_v44  ;;  %v1128_v43 = vld [vmem:[#allocation4 + $0x50] sm:$0xff]  ;;  %v1129_v44 = vld [vmem:[#allocation4 + $0x58] sm:$0xff]  ;;  %v1146_v47 = vld [vmem:[#allocation4 + $0xe0] sm:$0xff]  ;;  %v1567_v41 = vpack.c.bf16 %v1113_v39, %v1112_v38 }
 0x24c   : > { %v783_v52 = vsel %vm647_vm7, %v780_v48, %v782_v50  ;;  %v784_v53 = vsel %vm647_vm7, %v782_v50, %v780_v48  ;;  %v1537_v46 = vpack.c.bf16 %v1129_v44, %v1128_v43  ;;  %v1147_v48 = vld [vmem:[#allocation4 + $0xe8] sm:$0xff]  ;;  %v1130_v50 = vld [vmem:[#allocation4 + $0x60] sm:$0xff] }
 0x24d   : > { %v785_v0 = vmul.f32 %v783_v52, %v2023_v19  ;;  %v786_v3 = vmul.f32 %v784_v53, %v2030_v22  ;;  %867 = vmatprep.subr.bf16.mxu1 %v794_v51  ;;  %v847_v19 = vpop.f32.mrb[1].mxu1  ;;  %v1131_v51 = vld [vmem:[#allocation4 + $0x68] sm:$0xff]  ;;  %v1114_v43 = vld [vmem:[#allocation2 + $0xe0] sm:$0xff] }
 0x24e   : > { %868 = vmatpush1.bf16.msra.mxu1 %v793_v49  ;;  %v849_v54 = vpop.f32.mrb[2].mxu1  ;;  %v1539_v49 = vpack.c.bf16 %v1147_v48, %v1146_v47  ;;  %v1541_v52 = vpack.c.bf16 %v1131_v51, %v1130_v50  ;;  %v1115_v44 = vld [vmem:[#allocation2 + $0xe8] sm:$0xff]  ;;  %v1098_v48 = vld [vmem:[#allocation2 + $0x60] sm:$0xff]  ;;  %v1116_v51 = vld [vmem:[#allocation2 + $0xf0] sm:$0xff] }
 0x24f   : > { %v795_v5 = vpack.c.bf16 %v785_v0, %v785_v0  ;;  %v796_v9 = vpack.c.bf16 %v786_v3, %v786_v3  ;;  %v850_v22 = vpop.f32.mrb[3].mxu1  ;;  %v1571_v47 = vpack.c.bf16 %v1115_v44, %v1114_v43 }
 0x251   : > { %1437 = vmatprep.subr.msk.bf16.mxu1 %vm673_vm8, %v796_v9  ;;  %v856_v10 = vsel %vm673_vm8, %v795_v5, 0 }
 0x252   : > { %870 = vmatpush1.bf16.msra.mxu1 %v856_v10 }
 0x253   : > { %1516 = vmatprep.subr.bf16.mxu1 %v1515_v17  ;;  %v1086_v17 = vld [vmem:[#allocation2] sm:$0xff] }
 0x254   : > { %v906_v58 = vpop.permute.xlu0 %905  ;;  %v1549_v23 = vpack.c.bf16 %v1087_v18, %v1086_v17 }
 0x255   : > { %1438 = vmatmul.mubr.msk.bf16.vlgmr.msra.gmra.mrb[4].mxu1 %vm669_vm9, %v797_v1 }
 0x256   : > { %1518 = vmatpush3.bf16.msra.mxu1 %v1517_v21  ;;  %v1105_v21 = vld [vmem:[#allocation2 + $0x98] sm:$0xff] }
 0x257   : > { %1520 = vmatprep.subr.bf16.mxu1 %v1519_v25  ;;  %v1551_v24 = vpack.c.bf16 %v1105_v21, %v1104_v20  ;;  %v1088_v25 = vld [vmem:[#allocation2 + $0x10] sm:$0xff] }
 0x258   : > { %v1553_v15 = vpack.c.bf16 %v1089_v7, %v1088_v25 }
 0x25a   : > { %1522 = vmatpush3.bf16.msra.mxu1 %v1521_v13  ;;  %v1107_v13 = vld [vmem:[#allocation2 + $0xa8] sm:$0xff] }
 0x25b   : > { %1524 = vmatprep.subr.bf16.mxu1 %v1523_v26  ;;  %v1555_v16 = vpack.c.bf16 %v1107_v13, %v1106_v14  ;;  %v1090_v26 = vld [vmem:[#allocation2 + $0x20] sm:$0xff] }
 0x25e   : > { %1526 = vmatpush3.bf16.msra.mxu1 %v1525_v29  ;;  %v1557_v29 = vpack.c.bf16 %v1091_v27, %v1090_v26 }
 0x25f   : > { %1528 = vmatprep.subr.bf16.mxu1 %v1527_v31  ;;  %v1093_v31 = vld [vmem:[#allocation2 + $0x38] sm:$0xff] }
 0x262   : > { %1530 = vmatpush3.bf16.msra.mxu1 %v1529_v34  ;;  %v1561_v34 = vpack.c.bf16 %v1093_v31, %v1092_v8 }
 0x263   : > { %1532 = vmatprep.subr.bf16.mxu1 %v1531_v37  ;;  %v1095_v37 = vld [vmem:[#allocation2 + $0x48] sm:$0xff] }
 0x266   : > { %1534 = vmatpush3.bf16.msra.mxu1 %v1533_v40  ;;  %v1565_v40 = vpack.c.bf16 %v1095_v37, %v1094_v36 }
 0x267   : > { %1536 = vmatprep.subr.bf16.mxu1 %v1535_v45  ;;  %v1097_v45 = vld [vmem:[#allocation2 + $0x58] sm:$0xff] }
 0x26a   : > { %1538 = vmatpush3.bf16.msra.mxu1 %v1537_v46  ;;  %v1569_v46 = vpack.c.bf16 %v1097_v45, %v1096_v42 }
 0x26b   : > { %1540 = vmatprep.subr.bf16.mxu1 %v1539_v49  ;;  %v1099_v49 = vld [vmem:[#allocation2 + $0x68] sm:$0xff] }
 0x26c   : > { %v1573_v50 = vpack.c.bf16 %v1099_v49, %v1098_v48 }
 0x26e   : > { %1542 = vmatpush3.bf16.msra.mxu1 %v1541_v52  ;;  %v1117_v52 = vld [vmem:[#allocation2 + $0xf8] sm:$0xff] }
 0x328   : > { %v895_v55 = vpop.f32.mrb[4].mxu1 }
 0x329   : > { %v896_v56 = vadd.f32 %v895_v55, %v845_v2  ;;  %v897_v57 = vpop.f32.mrb[5].mxu1 }
 0x32a   : > { %v898_v59 = vadd.f32 %v897_v57, %v847_v19  ;;  %v899_v60 = vpop.f32.mrb[6].mxu1 }
 0x32b   : > { %v2149_v61 = vadd.f32 %v906_v58, %v896_v56  ;;  %v900_v62 = vpop.f32.mrb[7].mxu1  ;;  %v1102_v60 = vld [vmem:[#allocation2 + $0x80] sm:$0xff] }
 0x32c   : > { %v2151_v63 = vadd.f32 %v906_v58, %v898_v59  ;;  %v1103_v62 = vld [vmem:[#allocation2 + $0x88] sm:$0xff] }
 0x32d   : > { %910 = vst [vmem:[%s467_s27] sm:$0xff] %v2149_v61  ;;  %912 = vrot.lane.b32.xlu1 %v2149_v61, %s1701_s13 }
 0x32e   : > { %911 = vst [vmem:[%s467_s27 + $0x8] sm:$0xff] %v2151_v63  ;;  %914 = vrot.lane.b32.xlu0 %v2151_v63, %s1701_s13 }
 0x331   : > { %920 = vrot.lane.b32.xlu1 %v2149_v61, %s1704_s15 }
 0x332   : > { %922 = vrot.lane.b32.xlu0 %v2151_v63, %s1704_s15 }
 0x335   : > { %928 = vrot.lane.b32.xlu1 %v2149_v61, %s1705_s23 }
 0x336   : > { %930 = vrot.lane.b32.xlu0 %v2151_v63, %s1705_s23 }
 0x39f   : > { %v913_v53 = vpop.permute.xlu1 %912 }
 0x3a0   : > { %v915_v0 = vpop.permute.xlu0 %914 }
 0x3a1   : > { %v916_v3 = vsel %vm620_vm4, %v913_v53, %v915_v0  ;;  %v917_v5 = vsel %vm620_vm4, %v915_v0, %v913_v53  ;;  %v1575_v53 = vpack.c.bf16 %v1117_v52, %v1116_v51  ;;  %v1100_v0 = vld [vmem:[#allocation2 + $0x70] sm:$0xff] }
 0x3a2   : > { %v918_v19 = vmax.f32 %v2149_v61, %v916_v3  ;;  %v919_v54 = vmax.f32 %v2151_v63, %v917_v5  ;;  %v936_v61 = vld [vmem:[%s2205_s7] sm:$0xf]  ;;  %v1547_v63 = vpack.c.bf16 %v1103_v62, %v1102_v60  ;;  %v1101_v3 = vld [vmem:[#allocation2 + $0x78] sm:$0xff] }
 0x3a3   : > { %v921_v9 = vpop.permute.xlu1 %920  ;;  %v1577_v5 = vpack.c.bf16 %v1101_v3, %v1100_v0 }
 0x3a4   : > { %v923_v10 = vpop.permute.xlu0 %922 }
 0x3a5   : > { %v924_v1 = vsel %vm638_vm6, %v921_v9, %v923_v10  ;;  %v925_v2 = vsel %vm638_vm6, %v923_v10, %v921_v9  ;;  %v1148_v9 = vld [vmem:[#allocation4 + $0xf0] sm:$0xff]  ;;  %v1149_v10 = vld [vmem:[#allocation4 + $0xf8] sm:$0xff] }
 0x3a6   : > { %v926_v55 = vmax.f32 %v918_v19, %v924_v1  ;;  %v927_v56 = vmax.f32 %v919_v54, %v925_v2  ;;  %v1543_v1 = vpack.c.bf16 %v1149_v10, %v1148_v9  ;;  %v1132_v2 = vld [vmem:[#allocation4 + $0x70] sm:$0xff]  ;;  %v1133_v19 = vld [vmem:[#allocation4 + $0x78] sm:$0xff] }
 0x3a7   : > { %v929_v22 = vpop.permute.xlu1 %928  ;;  %v1545_v54 = vpack.c.bf16 %v1133_v19, %v1132_v2 }
 0x3a8   : > { %v931_v57 = vpop.permute.xlu0 %930  ;;  %1544 = vmatprep.subr.bf16.mxu1 %v1543_v1 }
 0x3a9   : > { %v932_v58 = vsel %vm647_vm7, %v929_v22, %v931_v57  ;;  %v933_v59 = vsel %vm647_vm7, %v931_v57, %v929_v22  ;;  %1546 = vmatpush3.bf16.msra.mxu1 %v1545_v54 }
 0x3aa   : > { %v934_v11 = vmax.f32 %v926_v55, %v932_v58  ;;  %v935_v12 = vmax.f32 %v927_v56, %v933_v59 }
 0x3ac   : > { %940 = vmatprep.subr.mxu0 %v935_v12 }
 0x3ad   : > { %941 = vmatpush1.msra.mxu0 %v934_v11 }
 0x3ae   : > { %1439 = vmatmul.mubr.msk.f32.vlgmr.msra.gmra.mrb[4].mxu0 %vm801_vm10, %v936_v61  ;;  %1015 = vmatprep.subr.mxu0 %v935_v12 }
 0x3af   : > { %1016 = vmatpush1.msra.mxu0 %v934_v11  ;;  %1079 = vmatprep.mubr.f32.mxu0 %v1706_v4  ;;  %v1108_v4 = vld [vmem:[#allocation2 + $0xb0] sm:$0xff] }
 0x3b0   : > { %1548 = vmatprep.subr.bf16.mxu0 %v1547_v63  ;;  %v1559_v30 = vpack.c.bf16 %v1109_v28, %v1108_v4 }
 0x3b2   : > { %1440 = vmatmul.mubr.msk.f32.vlgmr.msra.gmra.mrb[6].mxu0 %vm801_vm10, %v1011_v6 }
 0x3b3   : > { %1550 = vmatpush3.bf16.msra.mxu0 %v1549_v23 }
 0x3b4   : > { %1552 = vmatprep.subr.bf16.mxu0 %v1551_v24 }
 0x3b7   : > { %1554 = vmatpush3.bf16.msra.mxu0 %v1553_v15 }
 0x3b8   : > { %1556 = vmatprep.subr.bf16.mxu0 %v1555_v16 }
 0x3bb   : > { %1558 = vmatpush3.bf16.msra.mxu0 %v1557_v29 }
 0x3bc   : > { %1560 = vmatprep.subr.bf16.mxu0 %v1559_v30 }
 0x3bf   : > { %1562 = vmatpush3.bf16.msra.mxu0 %v1561_v34 }
 0x3c0   : > { %1564 = vmatprep.subr.bf16.mxu0 %v1563_v35 }
 0x3c3   : > { %1566 = vmatpush3.bf16.msra.mxu0 %v1565_v40 }
 0x3c4   : > { %1568 = vmatprep.subr.bf16.mxu0 %v1567_v41 }
 0x3c7   : > { %1570 = vmatpush3.bf16.msra.mxu0 %v1569_v46 }
 0x3c8   : > { %1572 = vmatprep.subr.bf16.mxu0 %v1571_v47 }
 0x3cb   : > { %1574 = vmatpush3.bf16.msra.mxu0 %v1573_v50 }
 0x3cc   : > { %1576 = vmatprep.subr.bf16.mxu0 %v1575_v53 }
 0x3cf   : > { %1578 = vmatpush3.bf16.msra.mxu0 %v1577_v5 }
 0x481   : > { %v1006_v22 = vpop.f32.mrb[4].mxu0 }
 0x482   : > { %v1008_v55 = vpop.f32.mrb[5].mxu0 }
 0x483   : > { %1284 = vmatprep.mubr.f32.mxu0 %v1008_v55 }
 0x484   : > { %1285 = vmatmul.mubr.f32.vlgmr.msra.gmra.mrb[8].mxu0 %v1006_v22 }
 0x485   : > { %v1081_v56 = vpop.f32.mrb[6].mxu0 }
 0x486   : > { %v1083_v57 = vpop.f32.mrb[7].mxu0 }
 0x487   : > { %1214 = vmatprep.mubr.f32.mxu1 %v1083_v57 }
 0x488   : > { %1215 = vmatmul.mubr.f32.vlgmr.msra.gmra.mrb[8].mxu1 %v1081_v56 }
 0x557   : > { %v1512_v58 = vpop.f32.mrb[8].mxu0 }
 0x558   : > { %v1513_v59 = vpop.f32.mrb[9].mxu0 }
 0x559   : > { %v1514_v60 = vadd.f32 %v1513_v59, %v1512_v58 }
 0x55b   : > { %v1477_v62 = vpop.f32.mrb[8].mxu1 }
 0x55c   : > { %v1478_v11 = vpop.f32.mrb[9].mxu1 }
 0x55d   : > { %v1479_v12 = vadd.f32 %v1478_v11, %v1477_v62 }
 0x55f   : > { %v1287_v61 = vadd.f32 %v1514_v60, %v1479_v12 }
 0x561   : > { %1290 = vst [vmem:[%s471_s17] sm:$0xf] %v1287_v61 }
 0x562 PF: > { %s25_s21 = sadd.s32 1, %s1691_s21  }
 0x563   : > { %p22_p5 = scmp.ge.s32.totalorder %s25_s21, 4  }
 0x565   :  { %24 = sbr.rel (!%p22_p5) target bundleno = 2 (0x2), region = 125 }
 0x56c   :  { %1326 = vsyncpa [#allocation3], 1 }
 0x56d   :  { %1328 = vsyncpa [#allocation3 + $0x1], 1 }
 0x56e   :  { %1329 = vsyncpa [#allocation5], 1 }

</bundles_post_ra>
